<compile_context>
chip_gen: v6e
topology: v6e:2x2x1
jax: 0.10.0
libtpu: 0.0.40
codegen_flags: <defaults>
</compile_context>

<pallas_src>
import jax
import jax.numpy as jnp
from jax.experimental import pallas as pl
from jax.experimental.pallas import tpu as pltpu


# Max tile sizes. TM*TV*4 B = 4 MiB per output buffer (8 MiB double-buffered):
# comfortably inside every generation's scoped VMEM while giving large,
# lane-dense, unmasked vector stores.
_TM_MAX = 256
_TV_MAX = 4096


def _round_up(x: int, m: int) -> int:
    return ((x + m - 1) // m) * m


def _onehot_logits_kernel(ids_ref, out_ref):
    """out[r, c] = 10.0 where (global vocab index of c) == ids[r], else 0.0.

    ids_ref : (TM, 1)  int32  — token id per row of this tile
    out_ref : (TM, TV) float32 — one tile of the flattened (rows, V) logits
    """
    tm, tv = out_ref.shape
    v_block = pl.program_id(1)
    # Shift token ids into this vocab tile's local coordinates (cheap (TM,1) op),
    # then one compare + one select per output vreg against a per-tile lane iota.
    target = ids_ref[...] - v_block * tv                        # (TM, 1)
    lane_iota = jax.lax.broadcasted_iota(jnp.int32, (tm, tv), 1)
    out_ref[...] = jnp.where(lane_iota == target,
                             jnp.float32(10.0), jnp.float32(0.0))


def onehot_logits(response_token_ids: jax.Array, vocab_size: int) -> jax.Array:
    """logits[i, j, token_id] = 10.0, else 0.0 — matches GPTWrapper.forward output."""
    B, L = response_token_ids.shape
    rows = B * L

    # Flatten (B, L) -> rows so V is the (lane) last axis of the output.
    ids_flat = response_token_ids.reshape(rows, 1).astype(jnp.int32)

    # Tile sizes: shrink to the (aligned) problem size for tiny inputs,
    # cap at the large operating point for big ones.
    tm = min(_TM_MAX, _round_up(rows, 8))
    tv = min(_TV_MAX, _round_up(vocab_size, 128))

    # Pad so every tile is full -> unmasked, lane-dense stores; slice afterwards.
    rows_p = _round_up(rows, tm)
    v_p = _round_up(vocab_size, tv)
    if rows_p != rows:
        # -1 never matches a vocab index, so padded rows stay all-zero.
        ids_flat = jnp.pad(ids_flat, ((0, rows_p - rows), (0, 0)),
                           constant_values=-1)

    grid = (rows_p // tm, v_p // tv)

    out = pl.pallas_call(
        _onehot_logits_kernel,
        out_shape=jax.ShapeDtypeStruct((rows_p, v_p), jnp.float32),
        grid=grid,
        in_specs=[pl.BlockSpec((tm, 1), lambda r, v: (r, 0))],
        out_specs=pl.BlockSpec((tm, tv), lambda r, v: (r, v)),
        compiler_params=pltpu.CompilerParams(
            dimension_semantics=("parallel", "parallel")),
    )(ids_flat)

    return out[:rows, :vocab_size].reshape(B, L, vocab_size)


def gpt_wrapper_forward(input_ids: jax.Array,
                        response_token_ids_list,
                        pad_token_id: int,
                        vocab_size: int) -> jax.Array:
    """JAX analogue of GPTWrapper.forward.

    input_ids              : (B, L) int32 — only used for max_length (as in the module).
    response_token_ids_list: list of B python lists of ints (the "API responses").
    Returns logits (B, max_length, vocab_size) float32.
    """
    # TODO(synk): OpenAI chat-completions call + tokenizer decode/encode has no
    # Pallas equivalent; responses are supplied as deterministic synthetic ids.
    max_length = int(input_ids.shape[1])

    # Pad / truncate responses to max_length (pure glue, mirrors the torch loop).
    padded = []
    for ids in response_token_ids_list:
        ids = list(ids)
        if len(ids) < max_length:
            ids = ids + [pad_token_id] * (max_length - len(ids))
        else:
            ids = ids[-max_length:]
        padded.append(ids)
    response_tensor = jnp.asarray(padded, dtype=jnp.int32)      # (B, max_length)

    # Hot path: scaled one-hot scatter into (B, L, V), done in Pallas.
    # (In production one would fall back to 10.0 * jax.nn.one_hot for outputs
    #  of only a few KB; kept on the kernel path here so the demo exercises it.)
    return onehot_logits(response_tensor, vocab_size)


def _ref_logits(padded_ids, vocab_size):
    ref_ids = jnp.asarray(padded_ids, dtype=jnp.int32)
    return 10.0 * jax.nn.one_hot(ref_ids, vocab_size, dtype=jnp.float32)


if __name__ == "__main__":
    key = jax.random.PRNGKey(0)

    # --- Demo shapes consistent with the forward ---------------------------
    B = 2            # batch of prompts
    L = 8            # sequence length (max_length)
    V = 128          # tokenizer.vocab_size
    PAD_ID = 0       # tokenizer.pad_token_id

    k1, k2, k3 = jax.random.split(key, 3)
    input_ids = jax.random.randint(k1, (B, L), 1, V, dtype=jnp.int32)

    # Deterministic stand-in for the API-generated responses: variable-length
    # token-id lists derived from PRNGKey(0).
    resp_lens = [5, 11]  # one shorter than L (padded), one longer (truncated)
    resp_keys = jax.random.split(k2, B)
    response_token_ids_list = [
        [int(t) for t in jax.random.randint(resp_keys[i], (resp_lens[i],), 1, V,
                                            dtype=jnp.int32)]
        for i in range(B)
    ]

    logits = gpt_wrapper_forward(input_ids, response_token_ids_list, PAD_ID, V)
    logits = jax.block_until_ready(logits)

    # Reference check (same padding/truncation + one-hot * 10).
    padded_ref = []
    for ids in response_token_ids_list:
        ids = list(ids)
        padded_ref.append(ids + [PAD_ID] * (L - len(ids)) if len(ids) < L
                          else ids[-L:])
    ref = _ref_logits(padded_ref, V)
    assert logits.shape == (B, L, V)
    assert logits.dtype == jnp.float32
    assert bool(jnp.all(logits == ref))

    # --- Second check: non-multiple-of-128 vocab exercises pad + slice path --
    B2, L2, V2 = 3, 7, 1000
    ids2 = jax.random.randint(k3, (B2, L2), 0, V2, dtype=jnp.int32)
    logits2 = jax.block_until_ready(onehot_logits(ids2, V2))
    ref2 = 10.0 * jax.nn.one_hot(ids2, V2, dtype=jnp.float32)
    assert logits2.shape == (B2, L2, V2)
    assert bool(jnp.all(logits2 == ref2))

    print("KERNEL_OK")
</pallas_src>

<mosaic_0001>
module attributes {stable_mosaic.version = 11 : i64} {
  func.func @_onehot_logits_kernel(%arg0: i32, %arg1: i32, %arg2: memref<16x1xi32, #tpu.memory_space<vmem>>, %arg3: memref<16x128xf32, #tpu.memory_space<vmem>>) attributes {dimension_semantics = [#tpu.dimension_semantics<parallel>, #tpu.dimension_semantics<parallel>], iteration_bounds = array<i64: 1, 1>, scalar_prefetch = 0 : i64, scratch_operands = 0 : i64, tpu.core_type = #tpu.core_type<tc>, window_params = [{transform_indices = @transform_0, window_bounds = array<i64: 16, 1>}, {transform_indices = @transform_1, window_bounds = array<i64: 16, 128>}]} {
    %c0 = arith.constant 0 : index
    %c0_0 = arith.constant 0 : index
    %0 = vector.load %arg2[%c0, %c0_0] : memref<16x1xi32, #tpu.memory_space<vmem>>, vector<16x1xi32>
    %c128_i32 = arith.constant 128 : i32
    %1 = arith.muli %arg1, %c128_i32 : i32
    %2 = vector.broadcast %1 : i32 to vector<16x1xi32>
    %3 = arith.subi %0, %2 : vector<16x1xi32>
    %4 = tpu.iota {dimensions = array<i32: 1>} : vector<16x128xi32>
    %5 = vector.broadcast %3 : vector<16x1xi32> to vector<16x128xi32>
    %6 = arith.cmpi eq, %4, %5 : vector<16x128xi32>
    %cst = arith.constant 1.000000e+01 : f32
    %cst_1 = arith.constant 0.000000e+00 : f32
    %7 = vector.broadcast %cst : f32 to vector<16x128xf32>
    %8 = vector.broadcast %cst_1 : f32 to vector<16x128xf32>
    %9 = arith.select %6, %7, %8 : vector<16x128xi1>, vector<16x128xf32>
    %c0_2 = arith.constant 0 : index
    %c0_3 = arith.constant 0 : index
    %10 = vector.load %arg3[%c0_2, %c0_3] : memref<16x128xf32, #tpu.memory_space<vmem>>, vector<16x128xf32>
    tpu.vector_store %arg3[%c0_2, %c0_3], %9 {strides = array<i32>} : memref<16x128xf32, #tpu.memory_space<vmem>>, vector<16x128xf32>,
    return
  }
  func.func @transform_0(%arg0: i32, %arg1: i32) -> (i32, i32) {
    %c0_i32 = arith.constant 0 : i32
    %c0_i32_0 = arith.constant 0 : i32
    return %arg0, %c0_i32 : i32, i32
  }
  func.func @transform_1(%arg0: i32, %arg1: i32) -> (i32, i32) {
    %c0_i32 = arith.constant 0 : i32
    return %arg0, %arg1 : i32, i32
  }
}

</mosaic_0001>

<bundles_post_ra>
// kernel: tpu_custom_call.1
= control target key start
LH: loop header
LB: loop body
LE: loop exit
PB: predicated region body
PF: predicated region fallthrough
CT: control target
= control target key end

     0   :  { %s97_s0 = inlined_call_operand.vmem [shape: s32[16,1], index: 0, kind: input, shape index: {}]   ;;  %s98_s1 = inlined_call_operand.hbm [shape: f32[16,128], index: 1, kind: output, shape index: {}]  }
   0x1   :  { %v9_v0 = vld [vmem:[%s97_s0] sm:$0xff] }
   0x2   :  { %6 = vsyncpa [#allocation3], 0  ;;  %v73_v1 = vmov 0   ;;  %v10_v2 = vld [vmem:[%s97_s0 + $0x8] sm:$0xff]  ;;  %v15_v3 = vlaneseq  ;;  %s74_s10 = smov [#allocation2]   ;;  %v75_v6 = vmov 0.0  }
   0x3   :  { %50 = vset.pattern.permute.xlu0 %v73_v1  ;;  %s34_s11 = sshll.u32 %s74_s10, 4  ;;  %s35_s11 = int_to_ptr.vmem [resolvable:$true] %s34_s11 }
   0x4   :  { %18 = vperm.xlu0 %50, %v9_v0   ;;  %v16_v4 = vand.u32 127, %v15_v3  ;;  %s51_s12 = scalar_lea.vmem %s35_s11, 256  ;;  %p56_p1 = scmp.lt.s32.totalorder %s35_s11, %s35_s11 }
   0x5   :  { %p52_p0 = scmp.ne.s32.totalorder %s35_s11, %s51_s12  ;;  %p57_p2 = scmp.lt.s32.totalorder %s51_s12, %s51_s12 }
   0x7   :  { %p58_p3 = por %p57_p2, %p56_p1 }
   0x8   :  { %21 = vperm.xlu0 %50, %v10_v2  }
   0x9   :  { %p59_p4 = pnand %p58_p3, %p52_p0 }
  0x7f   :  { %v19_v5 = vpop.permute.xlu0 %18 }
  0x80   :  { %vm23_vm0 = vcmp.eq.s32.totalorder %v16_v4, %v19_v5 }
  0x81   :  { %v25_v7 = vsel %vm23_vm0, 10.0, %v75_v6 }
  0x82   :  { %27 = vst [vmem:[#allocation2] sm:$0xff] %v25_v7 }
  0x83   :  { %v22_v8 = vpop.permute.xlu0 %21 }
  0x84   :  { %vm24_vm1 = vcmp.eq.s32.totalorder %v16_v4, %v22_v8 }
  0x85   :  { %v26_v9 = vsel %vm24_vm1, 10.0, %v75_v6 }
  0x86   :  { %28 = vst [vmem:[#allocation2 + $0x8] sm:$0xff] %v26_v9 }
  0x87   :  { %62 = shalt.err (!%p59_p4)
}
  0x88   :  { %s76_s0 = smov 128   ;;  %s77_s13 = smov 8  }
  0x89   :  { %40 = dma.vmem_to_hbm [thread:$0]  %s35_s11, 256, %s98_s1, [#allocation3], %s76_s0, %s76_s0, %s77_s13  }
  0x8a   :  { %71 = dma.done.wait [#allocation3], 256  }
  0x8b   :  { %72 = vsyncadd [#allocation3], 4294967040 }
  0x8c   :  { %44 = vsyncpa [#allocation3], 1 }

</bundles_post_ra>
